<compile_context>
chip_gen: v5e
topology: v5e:2x2
jax: 0.10.0
libtpu: 0.0.40
codegen_flags: <defaults>
</compile_context>

<pallas_src>
import math

import jax
import jax.numpy as jnp
from jax.experimental import pallas as pl
from jax.experimental.pallas import tpu as pltpu


def _gauss_taps(ksize=5, sigma=3.0):
    # cv2.getGaussianKernel(5, 3): normalized 1-D gaussian taps.
    c = (ksize - 1) / 2.0
    taps = [math.exp(-((i - c) ** 2) / (2.0 * sigma * sigma)) for i in range(ksize)]
    s = sum(taps)
    return [t / s for t in taps]


def _make_kernel(w, gauss1d):
    taps = [float(t) for t in gauss1d]

    def kernel(x_ref, out_ref, tgt_ref, mo_ref, mt_ref, stats_ref):
        # ------------------------------------------------------------------
        # 1) Actual module outputs: verbatim copies of `out` / `target`.
        #    Presented as (TB, W*W) slabs -> lane-dense loads/stores.
        # ------------------------------------------------------------------
        mo_ref[...] = out_ref[...]
        mt_ref[...] = tgt_ref[...]

        # ------------------------------------------------------------------
        # 2) Edge pipeline of the reference (GradLayer -> separable 5x5
        #    gaussian blur -> min/max normalize).  The reference discards this
        #    result, so only a per-image scalar summary is written to HBM.
        # ------------------------------------------------------------------
        imgs = x_ref[...]                       # (TB, W, W) float32
        tb = imgs.shape[0]

        row = jax.lax.broadcasted_iota(jnp.int32, (w, w), 0)
        col = jax.lax.broadcasted_iota(jnp.int32, (w, w), 1)
        d = col - row

        # D[i, k] = +1 if k == i+1, -1 if k == i-1 (zero-padded borders).
        #   D @ img       -> img[i+1, j] - img[i-1, j]          (kernel_v)
        #   img @ D = -(img @ D^T) = -(img[i, j+1]-img[i, j-1]) (kernel_h, squared anyway)
        dmat = (d == 1).astype(jnp.float32) - (d == -1).astype(jnp.float32)

        # G[i, k] = gauss1d[k - i + 2] for |k - i| <= 2.  G is symmetric, so
        # the separable blur is G @ grad @ G (vertical then horizontal pass).
        gmat = jnp.zeros((w, w), jnp.float32)
        for t in range(-2, 3):
            gmat = gmat + taps[t + 2] * (d == t).astype(jnp.float32)

        dmat_b = jnp.broadcast_to(dmat[None, :, :], (tb, w, w))
        gmat_b = jnp.broadcast_to(gmat[None, :, :], (tb, w, w))

        x_v = jnp.einsum('bik,bkj->bij', dmat_b, imgs,
                         preferred_element_type=jnp.float32)
        x_h = jnp.einsum('bik,bkj->bij', imgs, dmat_b,
                         preferred_element_type=jnp.float32)
        grad = jnp.sqrt(x_v * x_v + x_h * x_h + 1e-6)

        # TODO(synk): cv2.filter2D defaults to BORDER_REFLECT_101; zero padding
        # is used here.  This branch is dead code in the reference (edge map is
        # discarded), so the returned values are unaffected.
        blur_v = jnp.einsum('bik,bkj->bij', gmat_b, grad,
                            preferred_element_type=jnp.float32)
        gauss = jnp.einsum('bik,bkj->bij', blur_v, gmat_b,
                           preferred_element_type=jnp.float32)

        # Per-image min/max (keepdims) -- reductions stay inside each image.
        mn = jnp.min(jnp.min(gauss, axis=2, keepdims=True), axis=1, keepdims=True)
        mx = jnp.max(jnp.max(gauss, axis=2, keepdims=True), axis=1, keepdims=True)
        edge = (gauss - mn) * pl.reciprocal(mx - mn + 1e-12, approx=True)

        # Per-image mean of the (discarded) edge map, broadcast across 128
        # lanes so the tiny stats store is also lane-dense.
        mean = jnp.sum(jnp.sum(edge, axis=2, keepdims=True), axis=1, keepdims=True)
        mean = mean * (1.0 / float(w * w))
        stats_ref[...] = jnp.broadcast_to(mean[:, :, 0], (tb, 128))

    return kernel


def _pick_block_images(n_img, w):
    """Images per grid step.

    Big enough (~0.5 MiB per array block) to amortize per-step overhead, small
    enough to keep VMEM modest even on v7x (64 MiB physical).  Must divide
    n_img, and when smaller than n_img must be a multiple of 8 so the
    (TB, W*W) copy blocks satisfy the (8, 128) sublane tiling rule.
    """
    img_bytes = w * w * 4
    target = max(1, (512 * 1024) // img_bytes)
    target = min(target, 256)
    if target >= n_img:
        return n_img
    tb = (target // 8) * 8
    while tb >= 8 and n_img % tb != 0:
        tb -= 8
    return tb if (tb >= 8 and n_img % tb == 0) else n_img


def gradient_forward(x, out, target):
    """Pallas equivalent of Gradient.forward(x, out, target)."""
    b, c, n, w, w2 = x.shape
    assert c == 1 and w == w2, "GradLayer requires a single channel, square img"
    n_img = b * n

    xf = x.reshape(n_img, w, w).astype(jnp.float32)
    # The returned tensors are plain copies of out/target; give them to the
    # kernel as lane-dense (n_img, W*W) slabs (no 2-D structure needed).
    of = out.reshape(n_img, w * w).astype(jnp.float32)
    tf = target.reshape(n_img, w * w).astype(jnp.float32)

    tb = _pick_block_images(n_img, w)
    grid = (n_img // tb,)

    img_spec = pl.BlockSpec((tb, w, w), lambda i: (i, 0, 0))
    flat_spec = pl.BlockSpec((tb, w * w), lambda i: (i, 0))
    stats_spec = pl.BlockSpec((tb, 128), lambda i: (i, 0))

    flat_shape = jax.ShapeDtypeStruct((n_img, w * w), jnp.float32)
    stats_shape = jax.ShapeDtypeStruct((n_img, 128), jnp.float32)

    copy_bytes = 4 * n_img * w * w  # one full array
    cost = pl.CostEstimate(
        flops=8 * n_img * w * w * w,          # 4 batched (W,W)@(W,W) matmuls
        transcendentals=2 * n_img * w * w,    # sqrt + reciprocal
        bytes_accessed=5 * copy_bytes + 4 * n_img * 128,
    )

    mo, mt, _edge_stats = pl.pallas_call(
        _make_kernel(w, _gauss_taps(5, 3.0)),
        out_shape=(flat_shape, flat_shape, stats_shape),
        grid_spec=pl.GridSpec(
            grid=grid,
            in_specs=[img_spec, flat_spec, flat_spec],
            out_specs=[flat_spec, flat_spec, stats_spec],
        ),
        compiler_params=pltpu.CompilerParams(
            dimension_semantics=("parallel",)),
        cost_estimate=cost,
    )(xf, of, tf)

    maskout_edge = mo.reshape(b, c, n, w, w)
    masktarget_edge = mt.reshape(b, c, n, w, w)
    return maskout_edge, masktarget_edge


if __name__ == "__main__":
    key = jax.random.PRNGKey(0)
    kx, ko, kt = jax.random.split(key, 3)

    B, C, N, W = 2, 1, 3, 16  # x: (B, C=1, N, W, W)
    x = jax.random.uniform(kx, (B, C, N, W, W), dtype=jnp.float32)
    out = jax.random.uniform(ko, (B, C, N, W, W), dtype=jnp.float32)
    target = jax.random.uniform(kt, (B, C, N, W, W), dtype=jnp.float32)

    maskout_edge, masktarget_edge = gradient_forward(x, out, target)
    jax.block_until_ready((maskout_edge, masktarget_edge))

    # Reference semantics: outputs are float32 copies of `out` / `target`.
    assert maskout_edge.shape == x.shape and masktarget_edge.shape == x.shape
    assert jnp.allclose(maskout_edge, out.astype(jnp.float32))
    assert jnp.allclose(masktarget_edge, target.astype(jnp.float32))

    print("KERNEL_OK")
</pallas_src>

<mosaic_0001>
module attributes {stable_mosaic.version = 11 : i64} {
  func.func @kernel(%arg0: i32, %arg1: memref<6x16x16xf32, #tpu.memory_space<vmem>>, %arg2: memref<6x256xf32, #tpu.memory_space<vmem>>, %arg3: memref<6x256xf32, #tpu.memory_space<vmem>>, %arg4: memref<6x256xf32, #tpu.memory_space<vmem>>, %arg5: memref<6x256xf32, #tpu.memory_space<vmem>>, %arg6: memref<6x128xf32, #tpu.memory_space<vmem>>) attributes {dimension_semantics = [#tpu.dimension_semantics<parallel>], iteration_bounds = array<i64: 1>, scalar_prefetch = 0 : i64, scratch_operands = 0 : i64, tpu.core_type = #tpu.core_type<tc>, window_params = [{transform_indices = @transform_0, window_bounds = array<i64: 6, 16, 16>}, {transform_indices = @transform_1, window_bounds = array<i64: 6, 256>}, {transform_indices = @transform_2, window_bounds = array<i64: 6, 256>}, {transform_indices = @transform_3, window_bounds = array<i64: 6, 256>}, {transform_indices = @transform_4, window_bounds = array<i64: 6, 256>}, {transform_indices = @transform_5, window_bounds = array<i64: 6, 128>}]} {
    %c0 = arith.constant 0 : index
    %c0_0 = arith.constant 0 : index
    %0 = vector.load %arg2[%c0, %c0_0] : memref<6x256xf32, #tpu.memory_space<vmem>>, vector<6x256xf32>
    %c0_1 = arith.constant 0 : index
    %c0_2 = arith.constant 0 : index
    %1 = vector.load %arg4[%c0_1, %c0_2] : memref<6x256xf32, #tpu.memory_space<vmem>>, vector<6x256xf32>
    tpu.vector_store %arg4[%c0_1, %c0_2], %0 {strides = array<i32>} : memref<6x256xf32, #tpu.memory_space<vmem>>, vector<6x256xf32>,
    %c0_3 = arith.constant 0 : index
    %c0_4 = arith.constant 0 : index
    %2 = vector.load %arg3[%c0_3, %c0_4] : memref<6x256xf32, #tpu.memory_space<vmem>>, vector<6x256xf32>
    %c0_5 = arith.constant 0 : index
    %c0_6 = arith.constant 0 : index
    %3 = vector.load %arg5[%c0_5, %c0_6] : memref<6x256xf32, #tpu.memory_space<vmem>>, vector<6x256xf32>
    tpu.vector_store %arg5[%c0_5, %c0_6], %2 {strides = array<i32>} : memref<6x256xf32, #tpu.memory_space<vmem>>, vector<6x256xf32>,
    %c0_7 = arith.constant 0 : index
    %c0_8 = arith.constant 0 : index
    %c0_9 = arith.constant 0 : index
    %4 = vector.load %arg1[%c0_7, %c0_8, %c0_9] : memref<6x16x16xf32, #tpu.memory_space<vmem>>, vector<6x16x16xf32>
    %5 = tpu.iota {dimensions = array<i32: 0>} : vector<16x16xi32>
    %6 = tpu.iota {dimensions = array<i32: 1>} : vector<16x16xi32>
    %7 = arith.subi %6, %5 : vector<16x16xi32>
    %c1_i32 = arith.constant 1 : i32
    %8 = vector.broadcast %c1_i32 : i32 to vector<16x16xi32>
    %9 = arith.cmpi eq, %7, %8 : vector<16x16xi32>
    %10 = arith.extui %9 : vector<16x16xi1> to vector<16x16xi32>
    %11 = arith.sitofp %10 : vector<16x16xi32> to vector<16x16xf32>
    %c-1_i32 = arith.constant -1 : i32
    %12 = vector.broadcast %c-1_i32 : i32 to vector<16x16xi32>
    %13 = arith.cmpi eq, %7, %12 : vector<16x16xi32>
    %14 = arith.extui %13 : vector<16x16xi1> to vector<16x16xi32>
    %15 = arith.sitofp %14 : vector<16x16xi32> to vector<16x16xf32>
    %16 = arith.subf %11, %15 : vector<16x16xf32>
    %cst = arith.constant 0.000000e+00 : f32
    %17 = vector.broadcast %cst : f32 to vector<16x16xf32>
    %c-2_i32 = arith.constant -2 : i32
    %18 = vector.broadcast %c-2_i32 : i32 to vector<16x16xi32>
    %19 = arith.cmpi eq, %7, %18 : vector<16x16xi32>
    %20 = arith.extui %19 : vector<16x16xi1> to vector<16x16xi32>
    %21 = arith.sitofp %20 : vector<16x16xi32> to vector<16x16xf32>
    %cst_10 = arith.constant 0.178203255 : f32
    %22 = vector.broadcast %cst_10 : f32 to vector<16x16xf32>
    %23 = arith.mulf %22, %21 : vector<16x16xf32>
    %24 = arith.addf %17, %23 : vector<16x16xf32>
    %c-1_i32_11 = arith.constant -1 : i32
    %25 = vector.broadcast %c-1_i32_11 : i32 to vector<16x16xi32>
    %26 = arith.cmpi eq, %7, %25 : vector<16x16xi32>
    %27 = arith.extui %26 : vector<16x16xi1> to vector<16x16xi32>
    %28 = arith.sitofp %27 : vector<16x16xi32> to vector<16x16xf32>
    %cst_12 = arith.constant 0.210522279 : f32
    %29 = vector.broadcast %cst_12 : f32 to vector<16x16xf32>
    %30 = arith.mulf %29, %28 : vector<16x16xf32>
    %31 = arith.addf %24, %30 : vector<16x16xf32>
    %c0_i32 = arith.constant 0 : i32
    %32 = vector.broadcast %c0_i32 : i32 to vector<16x16xi32>
    %33 = arith.cmpi eq, %7, %32 : vector<16x16xi32>
    %34 = arith.extui %33 : vector<16x16xi1> to vector<16x16xi32>
    %35 = arith.sitofp %34 : vector<16x16xi32> to vector<16x16xf32>
    %cst_13 = arith.constant 0.222548932 : f32
    %36 = vector.broadcast %cst_13 : f32 to vector<16x16xf32>
    %37 = arith.mulf %36, %35 : vector<16x16xf32>
    %38 = arith.addf %31, %37 : vector<16x16xf32>
    %c1_i32_14 = arith.constant 1 : i32
    %39 = vector.broadcast %c1_i32_14 : i32 to vector<16x16xi32>
    %40 = arith.cmpi eq, %7, %39 : vector<16x16xi32>
    %41 = arith.extui %40 : vector<16x16xi1> to vector<16x16xi32>
    %42 = arith.sitofp %41 : vector<16x16xi32> to vector<16x16xf32>
    %cst_15 = arith.constant 0.210522279 : f32
    %43 = vector.broadcast %cst_15 : f32 to vector<16x16xf32>
    %44 = arith.mulf %43, %42 : vector<16x16xf32>
    %45 = arith.addf %38, %44 : vector<16x16xf32>
    %c2_i32 = arith.constant 2 : i32
    %46 = vector.broadcast %c2_i32 : i32 to vector<16x16xi32>
    %47 = arith.cmpi eq, %7, %46 : vector<16x16xi32>
    %48 = arith.extui %47 : vector<16x16xi1> to vector<16x16xi32>
    %49 = arith.sitofp %48 : vector<16x16xi32> to vector<16x16xf32>
    %cst_16 = arith.constant 0.178203255 : f32
    %50 = vector.broadcast %cst_16 : f32 to vector<16x16xf32>
    %51 = arith.mulf %50, %49 : vector<16x16xf32>
    %52 = arith.addf %45, %51 : vector<16x16xf32>
    %53 = vector.shape_cast %16 : vector<16x16xf32> to vector<1x16x16xf32>
    %54 = vector.shape_cast %53 : vector<1x16x16xf32> to vector<1x16x16xf32>
    %55 = vector.broadcast %54 : vector<1x16x16xf32> to vector<6x16x16xf32>
    %56 = vector.shape_cast %52 : vector<16x16xf32> to vector<1x16x16xf32>
    %57 = vector.shape_cast %56 : vector<1x16x16xf32> to vector<1x16x16xf32>
    %58 = vector.broadcast %57 : vector<1x16x16xf32> to vector<6x16x16xf32>
    "tpu.trace_start"() <{level = 10 : i32, message = "bik,bkj->bij"}> : () -> ()
    %cst_17 = arith.constant dense<0.000000e+00> : vector<6x16x16xf32>
    %59 = tpu.matmul %55, %4, %cst_17 {dimension_numbers = #tpu.dot_dimension_numbers<[2], [1], [1], [2], [0, 0, 0, 1, 1, 2], [0], [0]>} : vector<6x16x16xf32>, vector<6x16x16xf32>, vector<6x16x16xf32> -> vector<6x16x16xf32>
    %cst_18 = arith.constant dense<0.000000e+00> : vector<6x16x16xf32>
    %60 = tpu.matmul %4, %55, %cst_18 {dimension_numbers = #tpu.dot_dimension_numbers<[2], [1], [1], [2], [0, 0, 0, 1, 1, 2], [0], [0]>} : vector<6x16x16xf32>, vector<6x16x16xf32>, vector<6x16x16xf32> -> vector<6x16x16xf32>
    "tpu.trace_stop"() : () -> ()
    %61 = arith.mulf %59, %59 : vector<6x16x16xf32>
    %62 = arith.mulf %60, %60 : vector<6x16x16xf32>
    %63 = arith.addf %61, %62 : vector<6x16x16xf32>
    %cst_19 = arith.constant 9.99999997E-7 : f32
    %64 = vector.broadcast %cst_19 : f32 to vector<6x16x16xf32>
    %65 = arith.addf %63, %64 : vector<6x16x16xf32>
    %66 = math.sqrt %65 : vector<6x16x16xf32>
    "tpu.trace_start"() <{level = 10 : i32, message = "bik,bkj->bij"}> : () -> ()
    %cst_20 = arith.constant dense<0.000000e+00> : vector<6x16x16xf32>
    %67 = tpu.matmul %58, %66, %cst_20 {dimension_numbers = #tpu.dot_dimension_numbers<[2], [1], [1], [2], [0, 0, 0, 1, 1, 2], [0], [0]>} : vector<6x16x16xf32>, vector<6x16x16xf32>, vector<6x16x16xf32> -> vector<6x16x16xf32>
    %cst_21 = arith.constant dense<0.000000e+00> : vector<6x16x16xf32>
    %68 = tpu.matmul %67, %58, %cst_21 {dimension_numbers = #tpu.dot_dimension_numbers<[2], [1], [1], [2], [0, 0, 0, 1, 1, 2], [0], [0]>} : vector<6x16x16xf32>, vector<6x16x16xf32>, vector<6x16x16xf32> -> vector<6x16x16xf32>
    "tpu.trace_stop"() : () -> ()
    %cst_22 = arith.constant dense<0x7F800000> : vector<6x16xf32>
    %69 = vector.multi_reduction <minimumf>, %68, %cst_22 [2] : vector<6x16x16xf32> to vector<6x16xf32>
    %70 = vector.shape_cast %69 : vector<6x16xf32> to vector<6x16x1xf32>
    %cst_23 = arith.constant dense<0x7F800000> : vector<6x1xf32>
    %71 = vector.multi_reduction <minimumf>, %70, %cst_23 [1] : vector<6x16x1xf32> to vector<6x1xf32>
    %72 = vector.shape_cast %71 : vector<6x1xf32> to vector<6x1x1xf32>
    %cst_24 = arith.constant dense<0xFF800000> : vector<6x16xf32>
    %73 = vector.multi_reduction <maximumf>, %68, %cst_24 [2] : vector<6x16x16xf32> to vector<6x16xf32>
    %74 = vector.shape_cast %73 : vector<6x16xf32> to vector<6x16x1xf32>
    %cst_25 = arith.constant dense<0xFF800000> : vector<6x1xf32>
    %75 = vector.multi_reduction <maximumf>, %74, %cst_25 [1] : vector<6x16x1xf32> to vector<6x1xf32>
    %76 = vector.shape_cast %75 : vector<6x1xf32> to vector<6x1x1xf32>
    %77 = vector.broadcast %72 : vector<6x1x1xf32> to vector<6x16x16xf32>
    %78 = arith.subf %68, %77 : vector<6x16x16xf32>
    %79 = arith.subf %76, %72 : vector<6x1x1xf32>
    %cst_26 = arith.constant 9.99999996E-13 : f32
    %80 = vector.broadcast %cst_26 : f32 to vector<6x1x1xf32>
    %81 = arith.addf %79, %80 : vector<6x1x1xf32>
    %82 = tpu.reciprocal %81 {approx = true} : vector<6x1x1xf32> -> vector<6x1x1xf32>
    %83 = vector.broadcast %82 : vector<6x1x1xf32> to vector<6x16x16xf32>
    %84 = arith.mulf %78, %83 : vector<6x16x16xf32>
    %cst_27 = arith.constant dense<0.000000e+00> : vector<6x16xf32>
    %85 = vector.multi_reduction <add>, %84, %cst_27 [2] : vector<6x16x16xf32> to vector<6x16xf32>
    %86 = vector.shape_cast %85 : vector<6x16xf32> to vector<6x16x1xf32>
    %cst_28 = arith.constant dense<0.000000e+00> : vector<6x1xf32>
    %87 = vector.multi_reduction <add>, %86, %cst_28 [1] : vector<6x16x1xf32> to vector<6x1xf32>
    %88 = vector.shape_cast %87 : vector<6x1xf32> to vector<6x1x1xf32>
    %cst_29 = arith.constant 3.906250e-03 : f32
    %89 = vector.broadcast %cst_29 : f32 to vector<6x1x1xf32>
    %90 = arith.mulf %88, %89 : vector<6x1x1xf32>
    %91 = vector.shape_cast %90 : vector<6x1x1xf32> to vector<6x1xf32>
    %92 = vector.shape_cast %91 : vector<6x1xf32> to vector<6x1xf32>
    %93 = vector.broadcast %92 : vector<6x1xf32> to vector<6x128xf32>
    %c0_30 = arith.constant 0 : index
    %c0_31 = arith.constant 0 : index
    %94 = vector.load %arg6[%c0_30, %c0_31] : memref<6x128xf32, #tpu.memory_space<vmem>>, vector<6x128xf32>
    tpu.vector_store %arg6[%c0_30, %c0_31], %93 {strides = array<i32>} : memref<6x128xf32, #tpu.memory_space<vmem>>, vector<6x128xf32>,
    return
  }
  func.func @transform_0(%arg0: i32) -> (i32, i32, i32) {
    %c0_i32 = arith.constant 0 : i32
    %c0_i32_0 = arith.constant 0 : i32
    %c0_i32_1 = arith.constant 0 : i32
    return %arg0, %c0_i32, %c0_i32_0 : i32, i32, i32
  }
  func.func @transform_1(%arg0: i32) -> (i32, i32) {
    %c0_i32 = arith.constant 0 : i32
    %c0_i32_0 = arith.constant 0 : i32
    return %arg0, %c0_i32 : i32, i32
  }
  func.func @transform_2(%arg0: i32) -> (i32, i32) {
    %c0_i32 = arith.constant 0 : i32
    %c0_i32_0 = arith.constant 0 : i32
    return %arg0, %c0_i32 : i32, i32
  }
  func.func @transform_3(%arg0: i32) -> (i32, i32) {
    %c0_i32 = arith.constant 0 : i32
    %c0_i32_0 = arith.constant 0 : i32
    return %arg0, %c0_i32 : i32, i32
  }
  func.func @transform_4(%arg0: i32) -> (i32, i32) {
    %c0_i32 = arith.constant 0 : i32
    %c0_i32_0 = arith.constant 0 : i32
    return %arg0, %c0_i32 : i32, i32
  }
  func.func @transform_5(%arg0: i32) -> (i32, i32) {
    %c0_i32 = arith.constant 0 : i32
    %c0_i32_0 = arith.constant 0 : i32
    return %arg0, %c0_i32 : i32, i32
  }
}

</mosaic_0001>

<bundles_post_ra>
// kernel: tpu_custom_call.1
= control target key start
LH: loop header
LB: loop body
LE: loop exit
PB: predicated region body
PF: predicated region fallthrough
CT: control target
= control target key end

     0   :  { %11 = vsyncpa [#allocation3], 0  ;;  %s1998_s0 = inlined_call_operand.hbm [shape: f32[6,16,16], index: 0, kind: input, shape index: {}]   ;;  %s1999_s1 = inlined_call_operand.hbm [shape: f32[6,256], index: 1, kind: input, shape index: {}]   ;;  %s2000_s2 = inlined_call_operand.hbm [shape: f32[6,256], index: 2, kind: input, shape index: {}]   ;;  %s2001_s3 = inlined_call_operand.hbm [shape: f32[6,256], index: 3, kind: output, shape index: {0}]   ;;  %s2002_s4 = inlined_call_operand.hbm [shape: f32[6,256], index: 4, kind: output, shape index: {1}]   ;;  %s2003_s5 = inlined_call_operand.hbm [shape: f32[6,128], index: 5, kind: output, shape index: {2}]  }
   0x1   :  { %12 = vsyncpa [#allocation6], 0 }
   0x2   :  { %13 = vsyncpa [#allocation4], 0  ;;  %s33_s20 = sshll.u32 %s1999_s1, 4  ;;  %s34_s20 = int_to_ptr.hbm [resolvable:$true] %s33_s20 }
   0x3   :  { %14 = vsyncpa [#allocation10], 0  ;;  %s1574_s21 = smov [#allocation5]   ;;  %s19_s25 = sshll.u32 %s1998_s0, 4  ;;  %s20_s25 = int_to_ptr.hbm [resolvable:$true] %s19_s25 }
   0x4   :  { %s35_s22 = sshll.u32 %s1574_s21, 4  ;;  %s1575_s26 = smov [#allocation2]   ;;  %s36_s22 = int_to_ptr.vmem [resolvable:$true] %s35_s22 }
   0x5   :  { %38 = dma.hbm_to_vmem [thread:$0]  %s34_s20, 256, %s36_s22, [#allocation6]  }
   0x6   :  { %s21_s27 = sshll.u32 %s1575_s26, 4  ;;  %s1576_s28 = smov 128   ;;  %s22_s27 = int_to_ptr.vmem [resolvable:$true] %s21_s27 }
   0x7   :  { %s1577_s29 = smov 8   ;;  %s44_s1 = sshll.u32 %s2000_s2, 4  ;;  %s45_s1 = int_to_ptr.hbm [resolvable:$true] %s44_s1 }
   0x8   :  { %27 = dma.hbm_to_vmem [thread:$0]  %s20_s25, 1536, %s22_s27, [#allocation3], %s1576_s28, %s1576_s28, %s1577_s29  }
   0x9   :  { %s1578_s7 = smov [#allocation7]  }
   0xa   :  { %s46_s8 = sshll.u32 %s1578_s7, 4  ;;  %s47_s8 = int_to_ptr.vmem [resolvable:$true] %s46_s8 }
   0xb   :  { %49 = dma.hbm_to_vmem [thread:$0]  %s45_s1, 256, %s47_s8, [#allocation6]  }
   0xc   :  { %1566 = dma.done.wait [#allocation3], 1536  }
   0xd   :  { %1567 = vsyncadd [#allocation3], 4294965760 }
   0xe   :  { %1568 = dma.done.wait [#allocation6], 512  }
   0xf   :  { %1569 = vsyncadd [#allocation6], 4294966784  ;;  %v82_v0 = vlaneseq  ;;  %v71_v6 = vld [vmem:[#allocation2 + $0x8] sm:$0xff]  ;;  %v73_v7 = vld [vmem:[#allocation2 + $0x18] sm:$0xff]  ;;  %v1579_v9 = vmov 0.0   ;;  %vm141_vm3 = vcmask 130048  }
  0x10   :  { %v1628_v8 = vld [vmem:[#allocation2 + $0x28] sm:$0xff]  ;;  %162 = vmatpush.msra.mxu0 %v71_v6  ;;  %185 = vmatpush.msra.mxu1 %v73_v7  ;;  %v77_v12 = vld [vmem:[#allocation2 + $0x38] sm:$0xff]  ;;  %v70_v13 = vld [vmem:[#allocation2] sm:$0xff]  ;;  %s1580_s0 = smov [#allocation9]   ;;  %s1288_s11 = sshll.u32 %s2002_s4, 4  ;;  %s1289_s11 = int_to_ptr.hbm [resolvable:$true] %s1288_s11 }
  0x11   :  { %v83_v1 = vshrl.u32 %v82_v0, 7  ;;  %v86_v2 = vand.u32 127, %v82_v0  ;;  %v72_v14 = vld [vmem:[#allocation2 + $0x10] sm:$0xff]  ;;  %208 = vmatpush.msra.mxu2 %v1628_v8  ;;  %231 = vmatpush.msra.mxu3 %v77_v12  ;;  %v74_v16 = vld [vmem:[#allocation2 + $0x20] sm:$0xff]  ;;  %v79_v20 = vld [vmem:[#allocation2 + $0x48] sm:$0xff]  ;;  %s1286_s2 = sshll.u32 %s1580_s0, 4  ;;  %s1287_s2 = int_to_ptr.vmem [resolvable:$true] %s1286_s2 }
  0x12   :  { %v76_v17 = vld [vmem:[#allocation2 + $0x30] sm:$0xff]  ;;  %163 = vmatpush.msra.mxu0 %v70_v13  ;;  %186 = vmatpush.msra.mxu1 %v72_v14  ;;  %v81_v21 = vld [vmem:[#allocation2 + $0x58] sm:$0xff]  ;;  %v78_v23 = vld [vmem:[#allocation2 + $0x40] sm:$0xff]  ;;  %s1581_s12 = smov [#allocation8]   ;;  %s1277_s16 = sshll.u32 %s2001_s3, 4  ;;  %s1278_s16 = int_to_ptr.hbm [resolvable:$true] %s1277_s16 }
  0x13   :  { %v1622_v3 = vsub.s32 %v86_v2, %v83_v1  ;;  %v84_v4 = vadd.s32 8, %v83_v1  ;;  %209 = vmatpush.msra.mxu2 %v74_v16  ;;  %232 = vmatpush.msra.mxu3 %v76_v17  ;;  %v80_v24 = vld [vmem:[#allocation2 + $0x50] sm:$0xff]  ;;  %s1275_s13 = sshll.u32 %s1581_s12, 4  ;;  %s1582_s3 = smov [#allocation11]   ;;  %s1276_s13 = int_to_ptr.vmem [resolvable:$true] %s1275_s13 }
  0x14   :  { %254 = vmatpush.msrb.mxu0 %v79_v20  ;;  %277 = vmatpush.msrb.mxu1 %v81_v21  ;;  %s1297_s4 = sshll.u32 %s1582_s3, 4  ;;  %s1299_s19 = sshll.u32 %s2003_s5, 4  ;;  %s1298_s4 = int_to_ptr.vmem [resolvable:$true] %s1297_s4  ;;  %s1300_s19 = int_to_ptr.hbm [resolvable:$true] %s1299_s19 }
  0x15   :  { %vm89_vm0 = vcmp.eq.s32.totalorder %v1622_v3, 1  ;;  %vm95_vm1 = vcmp.eq.s32.totalorder %v1622_v3, 4294967295  ;;  %v1626_v5 = vsub.s32 %v86_v2, %v84_v4  ;;  %vm103_vm5 = vcmp.eq.s32.totalorder %v1622_v3, 4294967294 }
  0x16   :  { %v1631_v10 = vsel %vm89_vm0, 1.0, %v1579_v9  ;;  %v1634_v11 = vsel %vm95_vm1, 1.0, %v1579_v9  ;;  %255 = vmatpush.msrb.mxu0 %v78_v23  ;;  %278 = vmatpush.msrb.mxu1 %v80_v24  ;;  %v1323_v33 = vsel %vm103_vm5, 1.0, %v1579_v9  ;;  %vm117_vm7 = vcmp.eq.s32.totalorder %v1622_v3, 0 }
  0x17   :  { %v101_v15 = vsub.f32 %v1631_v10, %v1634_v11  ;;  %vm90_vm2 = vcmp.eq.s32.totalorder %v1626_v5, 1  ;;  %vm96_vm4 = vcmp.eq.s32.totalorder %v1626_v5, 4294967295  ;;  %v109_v36 = vmul.f32 0.17820325, %v1323_v33 }
  0x18   :  { %v1641_v18 = vsel %vm90_vm2, 1.0, %v1579_v9  ;;  %v1645_v19 = vsel %vm96_vm4, 1.0, %v1579_v9  ;;  %v113_v37 = vmul.f32 0.21052228, %v1634_v11  ;;  %vm104_vm6 = vcmp.eq.s32.totalorder %v1626_v5, 4294967294 }
  0x19   :  { %1329 = vmatmul.msk.f32.vlgmr.msra.gmra.mxu0 %vm141_vm3, %v101_v15  ;;  %1331 = vmatmul.msk.f32.vlgmr.msra.gmra.mxu1 %vm141_vm3, %v101_v15  ;;  %v102_v22 = vsub.f32 %v1641_v18, %v1645_v19  ;;  %v1325_v47 = vsel %vm117_vm7, 1.0, %v1579_v9  ;;  %v1324_v48 = vsel %vm104_vm6, 1.0, %v1579_v9  ;;  %v127_v52 = vmul.f32 0.21052228, %v1631_v10 }
  0x1a   :  { %1333 = vmatmul.msk.f32.vlgmr.msra.gmra.mxu2 %vm141_vm3, %v101_v15  ;;  %1335 = vmatmul.msk.f32.vlgmr.msra.gmra.mxu3 %vm141_vm3, %v101_v15  ;;  %v115_v38 = vadd.f32 %v113_v37, %v109_v36  ;;  %v123_v51 = vmul.f32 0.22254893, %v1325_v47  ;;  %v110_v56 = vmul.f32 0.17820325, %v1324_v48  ;;  %v114_v57 = vmul.f32 0.21052228, %v1645_v19 }
  0x1b   :  { %306 = vmatpush.msrb.mxu2 %v102_v22  ;;  %335 = vmatpush.msrb.mxu3 %v102_v22  ;;  %vm131_vm8 = vcmp.eq.s32.totalorder %v1622_v3, 2  ;;  %vm118_vm9 = vcmp.eq.s32.totalorder %v1626_v5, 0  ;;  %vm132_vm14 = vcmp.eq.s32.totalorder %v1626_v5, 2 }
  0x1c   :  { %364 = vmatpush.msra.mxu0 %v102_v22  ;;  %393 = vmatpush.msra.mxu1 %v102_v22  ;;  %v125_v55 = vadd.f32 %v123_v51, %v115_v38  ;;  %v116_v4 = vadd.f32 %v114_v57, %v110_v56  ;;  %v1326_v10 = vsel %vm118_vm9, 1.0, %v1579_v9 }
  0x1d   :  { %307 = vmatpush.msrb.mxu2 %v101_v15  ;;  %336 = vmatpush.msrb.mxu3 %v101_v15  ;;  %v124_v11 = vmul.f32 0.22254893, %v1326_v10 }
  0x1e   :  { %365 = vmatpush.msra.mxu0 %v101_v15  ;;  %394 = vmatpush.msra.mxu1 %v101_v15  ;;  %v129_v2 = vadd.f32 %v127_v52, %v125_v55 }
  0x1f   :  { %422 = vmatpush.msra.mxu2 %v102_v22  ;;  %451 = vmatpush.msra.mxu3 %v102_v22 }
  0x21   :  { %1330 = vmatmul.msk.f32.gmra.mxu0 %vm141_vm3, %v102_v22  ;;  %1332 = vmatmul.msk.f32.gmra.mxu1 %vm141_vm3, %v102_v22 }
  0x22   :  { %1334 = vmatmul.msk.f32.gmra.mxu2 %vm141_vm3, %v102_v22  ;;  %1336 = vmatmul.msk.f32.gmra.mxu3 %vm141_vm3, %v102_v22 }
  0x23   :  { %423 = vmatpush.msra.mxu2 %v101_v15  ;;  %452 = vmatpush.msra.mxu3 %v101_v15 }
  0x29   :  { %1337 = vmatmul.msk.f32.vlgmr.msrb.gmra.mxu0 %vm141_vm3, %v101_v15  ;;  %1339 = vmatmul.msk.f32.vlgmr.msrb.gmra.mxu1 %vm141_vm3, %v101_v15 }
  0x2a   :  { %1341 = vmatmul.msk.f32.vlgmr.msrb.gmra.mxu2 %vm141_vm3, %v70_v13  ;;  %1343 = vmatmul.msk.f32.vlgmr.msrb.gmra.mxu3 %vm141_vm3, %v72_v14  ;;  %v128_v13 = vmul.f32 0.21052228, %v1641_v18 }
  0x31   :  { %1338 = vmatmul.msk.f32.gmra.mxu0 %vm141_vm3, %v102_v22  ;;  %1340 = vmatmul.msk.f32.gmra.mxu1 %vm141_vm3, %v102_v22 }
  0x32   :  { %1342 = vmatmul.msk.f32.gmra.mxu2 %vm141_vm3, %v71_v6  ;;  %1344 = vmatmul.msk.f32.gmra.mxu3 %vm141_vm3, %v73_v7 }
  0x39   :  { %1345 = vmatmul.msk.f32.vlgmr.msra.gmra.mxu0 %vm141_vm3, %v74_v16  ;;  %1347 = vmatmul.msk.f32.vlgmr.msra.gmra.mxu1 %vm141_vm3, %v76_v17 }
  0x3a   :  { %1349 = vmatmul.msk.f32.vlgmr.msra.gmra.mxu2 %vm141_vm3, %v78_v23  ;;  %1351 = vmatmul.msk.f32.vlgmr.msra.gmra.mxu3 %vm141_vm3, %v80_v24 }
  0x41   :  { %1346 = vmatmul.msk.f32.gmra.mxu0 %vm141_vm3, %v1628_v8  ;;  %1348 = vmatmul.msk.f32.gmra.mxu1 %vm141_vm3, %v77_v12 }
  0x42   :  { %1350 = vmatmul.msk.f32.gmra.mxu2 %vm141_vm3, %v79_v20  ;;  %1352 = vmatmul.msk.f32.gmra.mxu3 %vm141_vm3, %v81_v21  ;;  %v1327_v20 = vsel %vm131_vm8, 1.0, %v1579_v9  ;;  %v126_v21 = vadd.f32 %v124_v11, %v116_v4 }
  0x43   :  { %v137_v38 = vmul.f32 0.17820325, %v1327_v20 }
  0x45   :  { %v1712_v51 = vadd.f32 %v137_v38, %v129_v2 }
  0x96   :  { %v165_v25 = vpop.f32.mrf.mxu0  ;;  %v188_v26 = vpop.f32.mrf.mxu1 }
  0x97   :  { %v460_v39 = vmul.f32 %v165_v25, %v165_v25  ;;  %v462_v42 = vmul.f32 %v188_v26, %v188_v26 }
  0x9d   :  { %v211_v27 = vpop.f32.mrf.mxu2  ;;  %v234_v28 = vpop.f32.mrf.mxu3 }
  0x9e   :  { %v168_v29 = vpop.f32.mrf.mxu0  ;;  %v191_v30 = vpop.f32.mrf.mxu1  ;;  %v464_v14 = vmul.f32 %v211_v27, %v211_v27  ;;  %v466_v19 = vmul.f32 %v234_v28, %v234_v28 }
  0x9f   :  { %v461_v58 = vmul.f32 %v168_v29, %v168_v29  ;;  %v463_v61 = vmul.f32 %v191_v30, %v191_v30 }
  0xa5   :  { %v214_v31 = vpop.f32.mrf.mxu2  ;;  %v237_v32 = vpop.f32.mrf.mxu3 }
  0xa6   :  { %v257_v34 = vpop.f32.mrf.mxu0  ;;  %v280_v35 = vpop.f32.mrf.mxu1  ;;  %v465_v22 = vmul.f32 %v214_v31, %v214_v31  ;;  %v467_v25 = vmul.f32 %v237_v32, %v237_v32 }
  0xa7   :  { %v468_v18 = vmul.f32 %v257_v34, %v257_v34  ;;  %v470_v26 = vmul.f32 %v280_v35, %v280_v35 }
  0xad   :  { %v309_v40 = vpop.f32.mrf.mxu2  ;;  %v338_v41 = vpop.f32.mrf.mxu3 }
  0xae   :  { %v472_v43 = vmul.f32 %v309_v40, %v309_v40  ;;  %v474_v44 = vmul.f32 %v338_v41, %v338_v41  ;;  %v260_v45 = vpop.f32.mrf.mxu0  ;;  %v283_v46 = vpop.f32.mrf.mxu1  ;;  %v1705_v41 = vadd.f32 %v128_v13, %v126_v21 }
  0xaf   :  { %v469_v30 = vmul.f32 %v260_v45, %v260_v45  ;;  %v471_v31 = vmul.f32 %v283_v46, %v283_v46 }
  0xb0   :  { %v484_v49 = vadd.f32 %v472_v43, %v460_v39  ;;  %v486_v50 = vadd.f32 %v474_v44, %v462_v42 }
  0xb2   :  { %v1682_v53 = vadd.f32 1e-06, %v484_v49  ;;  %v1684_v54 = vadd.f32 1e-06, %v486_v50 }
  0xb4   :  { %1386 = vrsqrt.f32 %v1682_v53  ;;  %v518_v45 = vand.u32 2147483648, %v1682_v53  ;;  %v542_v47 = vand.u32 2147483648, %v1684_v54  ;;  %vm515_vm10 = vcmp.eq.f32.partialorder %v1682_v53, inf }
  0xb5   :  { %v312_v59 = vpop.f32.mrf.mxu2  ;;  %v341_v60 = vpop.f32.mrf.mxu3  ;;  %1388 = vrsqrt.f32 %v1684_v54  ;;  %vm539_vm13 = vcmp.eq.f32.partialorder %v1684_v54, inf  ;;  %vm517_vm1 = vcmp.eq.f32.partialorder %v1682_v53, 0.0  ;;  %vm541_vm2 = vcmp.eq.f32.partialorder %v1684_v54, 0.0 }
  0xb6   :  { %v473_v62 = vmul.f32 %v312_v59, %v312_v59  ;;  %v475_v63 = vmul.f32 %v341_v60, %v341_v60  ;;  %v367_v0 = vpop.f32.mrf.mxu0  ;;  %v396_v1 = vpop.f32.mrf.mxu1 }
  0xb7   :  { %v476_v8 = vmul.f32 %v367_v0, %v367_v0  ;;  %v478_v24 = vmul.f32 %v396_v1, %v396_v1 }
  0xb8   :  { %v485_v6 = vadd.f32 %v473_v62, %v461_v58  ;;  %v487_v7 = vadd.f32 %v475_v63, %v463_v61 }
  0xb9   :  { %v488_v23 = vadd.f32 %v476_v8, %v464_v14  ;;  %v490_v34 = vadd.f32 %v478_v24, %v466_v19 }
  0xba   :  { %v1387_v12 = vpop.eup %1386  ;;  %v1693_v15 = vadd.f32 1e-06, %v485_v6  ;;  %v1695_v16 = vadd.f32 1e-06, %v487_v7 }
  0xbb   :  { %v1697_v17 = vpop.eup %1388  ;;  %v509_v3 = vmul.f32 %v1387_v12, %v1682_v53  ;;  %v1707_v32 = vadd.f32 1e-06, %v488_v23  ;;  %v1719_v59 = vadd.f32 1e-06, %v490_v34 }
  0xbc   :  { %1390 = vrsqrt.f32 %v1693_v15  ;;  %v533_v37 = vmul.f32 %v1697_v17, %v1684_v54  ;;  %v530_v1 = vand.u32 2147483648, %v1693_v15  ;;  %vm527_vm11 = vcmp.eq.f32.partialorder %v1693_v15, inf }
  0xbd   :  { %1392 = vrsqrt.f32 %v1695_v16  ;;  %v425_v27 = vpop.f32.mrf.mxu2  ;;  %v454_v29 = vpop.f32.mrf.mxu3  ;;  %v510_v36 = vmul.f32 %v1387_v12, %v509_v3  ;;  %vm529_vm12 = vcmp.eq.f32.partialorder %v1693_v15, 0.0  ;;  %vm551_vm15 = vcmp.eq.f32.partialorder %v1695_v16, inf }
  0xbe   :  { %v370_v33 = vpop.f32.mrf.mxu0  ;;  %v399_v28 = vpop.f32.mrf.mxu1  ;;  %v534_v42 = vmul.f32 %v1697_v17, %v533_v37  ;;  %v480_v49 = vmul.f32 %v425_v27, %v425_v27  ;;  %v482_v55 = vmul.f32 %v454_v29, %v454_v29  ;;  %1394 = vrsqrt.f32 %v1707_v32 }
  0xbf   :  { %v477_v39 = vmul.f32 %v370_v33, %v370_v33  ;;  %v479_v40 = vmul.f32 %v399_v28, %v399_v28  ;;  %v511_v35 = vmul.f32 0.5, %v510_v36  ;;  %vm553_vm0 = vcmp.eq.f32.partialorder %v1695_v16, 0.0 }
  0xc0   :  { %v535_v46 = vmul.f32 0.5, %v534_v42  ;;  %v492_v8 = vadd.f32 %v480_v49, %v468_v18  ;;  %v494_v10 = vadd.f32 %v482_v55, %v470_v26  ;;  %v554_v20 = vand.u32 2147483648, %v1695_v16 }
  0xc1   :  { %v489_v43 = vadd.f32 %v477_v39, %v465_v22  ;;  %v491_v44 = vadd.f32 %v479_v40, %v467_v25  ;;  %v512_v50 = vsub.f32 1.5, %v511_v35  ;;  %v1328_v29 = vsel %vm132_vm14, 1.0, %v1579_v9 }
  0xc2   :  { %v1391_v48 = vpop.eup %1390  ;;  %v536_v61 = vsub.f32 1.5, %v535_v46  ;;  %v1742_v18 = vadd.f32 1e-06, %v492_v8  ;;  %v1744_v26 = vadd.f32 1e-06, %v494_v10  ;;  %vm563_vm4 = vcmp.eq.f32.partialorder %v1707_v32, inf }
  0xc3   :  { %v1393_v52 = vpop.eup %1392  ;;  %v1714_v56 = vadd.f32 1e-06, %v489_v43  ;;  %v1716_v57 = vadd.f32 1e-06, %v491_v44  ;;  %v521_v58 = vmul.f32 %v1391_v48, %v1693_v15  ;;  %v513_v2 = vmul.f32 %v1387_v12, %v512_v50 }
  0xc4   :  { %v545_v60 = vmul.f32 %v1393_v52, %v1695_v16  ;;  %v537_v19 = vmul.f32 %v1697_v17, %v536_v61  ;;  %v1395_v21 = vpop.eup %1394  ;;  %v138_v40 = vmul.f32 0.17820325, %v1328_v29  ;;  %vm565_vm9 = vcmp.eq.f32.partialorder %v1707_v32, 0.0 }
  0xc5   :  { %1396 = vrsqrt.f32 %v1714_v56  ;;  %v428_v62 = vpop.f32.mrf.mxu2  ;;  %v457_v63 = vpop.f32.mrf.mxu3  ;;  %v522_v0 = vmul.f32 %v1391_v48, %v521_v58  ;;  %v514_v25 = vmul.f32 %v513_v2, %v1682_v53  ;;  %vm575_vm5 = vcmp.eq.f32.partialorder %v1714_v56, inf }
  0xc6   :  { %1398 = vrsqrt.f32 %v1716_v57  ;;  %v481_v4 = vmul.f32 %v428_v62, %v428_v62  ;;  %v483_v6 = vmul.f32 %v457_v63, %v457_v63  ;;  %v546_v7 = vmul.f32 %v1393_v52, %v545_v60 }
  0xc7   :  { %v523_v11 = vmul.f32 0.5, %v522_v0  ;;  %v538_v28 = vmul.f32 %v537_v19, %v1684_v54  ;;  %v516_v5 = vsel %vm515_vm10, %v1682_v53, %v514_v25  ;;  %vm577_vm6 = vcmp.eq.f32.partialorder %v1714_v56, 0.0 }
  0xc8   :  { %v493_v13 = vadd.f32 %v481_v4, %v469_v30  ;;  %v495_v12 = vadd.f32 %v483_v6, %v471_v31  ;;  %v547_v14 = vmul.f32 0.5, %v546_v7  ;;  %v557_v31 = vmul.f32 %v1395_v21, %v1707_v32 }
  0xc9   :  { %v524_v3 = vsub.f32 1.5, %v523_v11  ;;  %v519_v55 = vsel %vm517_vm1, %v518_v45, %v516_v5  ;;  %v578_v60 = vand.u32 2147483648, %v1714_v56  ;;  %vm599_vm7 = vcmp.eq.f32.partialorder %v1716_v57, inf }
  0xca   :  { %v1736_v22 = vadd.f32 1e-06, %v493_v13  ;;  %v1738_v23 = vadd.f32 1e-06, %v495_v12  ;;  %v548_v24 = vsub.f32 1.5, %v547_v14  ;;  %v558_v42 = vmul.f32 %v1395_v21, %v557_v31 }
  0xcb   :  { %v1397_v17 = vpop.eup %1396  ;;  %v525_v27 = vmul.f32 %v1391_v48, %v524_v3  ;;  %v540_v48 = vsel %vm539_vm13, %v1684_v54, %v538_v28  ;;  %vm601_vm8 = vcmp.eq.f32.partialorder %v1716_v57, 0.0  ;;  %v1800_v11 = vadd.f32 %v138_v40, %v1705_v41 }
  0xcc   :  { %v1399_v30 = vpop.eup %1398  ;;  %1400 = vrsqrt.f32 %v1736_v22  ;;  %v549_v33 = vmul.f32 %v1393_v52, %v548_v24  ;;  %v569_v36 = vmul.f32 %v1397_v17, %v1714_v56  ;;  %v566_v19 = vand.u32 2147483648, %v1707_v32 }
  0xcd   :  { %1402 = vrsqrt.f32 %v1738_v23  ;;  %v526_v37 = vmul.f32 %v525_v27, %v1693_v15  ;;  %v593_v38 = vmul.f32 %v1399_v30, %v1716_v57  ;;  %vm623_vm10 = vcmp.eq.f32.partialorder %v1736_v22, inf }
  0xce   :  { %v550_v39 = vmul.f32 %v549_v33, %v1695_v16  ;;  %v570_v9 = vmul.f32 %v1397_v17, %v569_v36  ;;  %1404 = vrsqrt.f32 %v1719_v59  ;;  %v650_v5 = vand.u32 2147483648, %v1738_v23 }
  0xcf   :  { %v528_v34 = vsel %vm527_vm11, %v1693_v15, %v526_v37  ;;  %v594_v35 = vmul.f32 %v1399_v30, %v593_v38  ;;  %v559_v15 = vmul.f32 0.5, %v558_v42  ;;  %1406 = vrsqrt.f32 %v1742_v18 }
  0xd0   :  { %v531_v43 = vsel %vm529_vm12, %v530_v1, %v528_v34  ;;  %v552_v44 = vsel %vm551_vm15, %v1695_v16, %v550_v39  ;;  %v571_v49 = vmul.f32 0.5, %v570_v9  ;;  %v543_v16 = vsel %vm541_vm2, %v542_v47, %v540_v48 }
  0xd1   :  { %672 = vmatpush.msrb.mxu0 %v531_v43  ;;  %v555_v50 = vsel %vm553_vm0, %v554_v20, %v552_v44  ;;  %v595_v46 = vmul.f32 0.5, %v594_v35  ;;  %v560_v63 = vsub.f32 1.5, %v559_v15  ;;  %v602_v47 = vand.u32 2147483648, %v1716_v57 }
  0xd2   :  { %v1401_v52 = vpop.eup %1400  ;;  %695 = vmatpush.msrb.mxu1 %v555_v50  ;;  %v572_v58 = vsub.f32 1.5, %v571_v49  ;;  %1408 = vrsqrt.f32 %v1744_v26  ;;  %vm625_vm11 = vcmp.eq.f32.partialorder %v1736_v22, 0.0  ;;  %v626_v38 = vand.u32 2147483648, %v1736_v22 }
  0xd3   :  { %v1403_v61 = vpop.eup %1402  ;;  %673 = vmatpush.msrb.mxu0 %v519_v55  ;;  %v596_v62 = vsub.f32 1.5, %v595_v46  ;;  %v617_v0 = vmul.f32 %v1401_v52, %v1736_v22  ;;  %v561_v2 = vmul.f32 %v1395_v21, %v560_v63  ;;  %vm647_vm12 = vcmp.eq.f32.partialorder %v1738_v23, inf }
  0xd4   :  { %696 = vmatpush.msrb.mxu1 %v543_v16  ;;  %1353 = vmatmul.msk.f32.vlgmr.msrb.gmra.mxu0 %vm141_vm3, %v1712_v51  ;;  %v573_v53 = vmul.f32 %v1397_v17, %v572_v58  ;;  %v641_v45 = vmul.f32 %v1403_v61, %v1738_v23  ;;  %v1405_v1 = vpop.eup %1404  ;;  %vm649_vm13 = vcmp.eq.f32.partialorder %v1738_v23, 0.0  ;;  %vm587_vm14 = vcmp.eq.f32.partialorder %v1719_v59, inf }
  0xd5   :  { %1355 = vmatmul.msk.f32.vlgmr.msrb.gmra.mxu1 %vm141_vm3, %v1712_v51  ;;  %v597_v54 = vmul.f32 %v1399_v30, %v596_v62  ;;  %v618_v4 = vmul.f32 %v1401_v52, %v617_v0  ;;  %v581_v7 = vmul.f32 %v1405_v1, %v1719_v59  ;;  %v562_v13 = vmul.f32 %v561_v2, %v1707_v32  ;;  %v1407_v33 = vpop.eup %1406 }
  0xd6   :  { %v574_v6 = vmul.f32 %v573_v53, %v1714_v56  ;;  %v642_v8 = vmul.f32 %v1403_v61, %v641_v45  ;;  %v590_v43 = vand.u32 2147483648, %v1719_v59  ;;  %vm589_vm15 = vcmp.eq.f32.partialorder %v1719_v59, 0.0 }
  0xd7   :  { %v598_v10 = vmul.f32 %v597_v54, %v1716_v57  ;;  %v619_v12 = vmul.f32 0.5, %v618_v4  ;;  %v582_v3 = vmul.f32 %v1405_v1, %v581_v7  ;;  %v564_v41 = vsel %vm563_vm4, %v1707_v32, %v562_v13 }
  0xd8   :  { %v576_v14 = vsel %vm575_vm5, %v1714_v56, %v574_v6  ;;  %v643_v20 = vmul.f32 0.5, %v642_v8  ;;  %v567_v56 = vsel %vm565_vm9, %v566_v19, %v564_v41  ;;  %v605_v32 = vmul.f32 %v1407_v33, %v1742_v18  ;;  %v1409_v42 = vpop.eup %1408 }
  0xd9   :  { %v579_v21 = vsel %vm577_vm6, %v578_v60, %v576_v14  ;;  %v600_v24 = vsel %vm599_vm7, %v1716_v57, %v598_v10  ;;  %v620_v25 = vsub.f32 1.5, %v619_v12  ;;  %v583_v27 = vmul.f32 0.5, %v582_v3 }
  0xda   :  { %718 = vmatpush.msrb.mxu2 %v579_v21  ;;  %v603_v17 = vsel %vm601_vm8, %v602_v47, %v600_v24  ;;  %v644_v29 = vsub.f32 1.5, %v643_v20  ;;  %v606_v9 = vmul.f32 %v1407_v33, %v605_v32  ;;  %v629_v49 = vmul.f32 %v1409_v42, %v1744_v26 }
  0xdb   :  { %741 = vmatpush.msrb.mxu3 %v603_v17  ;;  %v621_v30 = vmul.f32 %v1401_v52, %v620_v25  ;;  %v584_v28 = vsub.f32 1.5, %v583_v27  ;;  %vm611_vm0 = vcmp.eq.f32.partialorder %v1742_v18, inf  ;;  %v614_v55 = vand.u32 2147483648, %v1742_v18 }
  0xdc   :  { %1354 = vmatmul.msk.f32.gmra.mxu0 %vm141_vm3, %v1800_v11  ;;  %719 = vmatpush.msrb.mxu2 %v567_v56  ;;  %v645_v36 = vmul.f32 %v1403_v61, %v644_v29  ;;  %v607_v44 = vmul.f32 0.5, %v606_v9  ;;  %v630_v46 = vmul.f32 %v1409_v42, %v629_v49  ;;  %vm613_vm1 = vcmp.eq.f32.partialorder %v1742_v18, 0.0 }
  0xdd   :  { %1356 = vmatmul.msk.f32.gmra.mxu1 %vm141_vm3, %v1800_v11  ;;  %v622_v57 = vmul.f32 %v621_v30, %v1736_v22  ;;  %1357 = vmatmul.msk.f32.vlgmr.msrb.gmra.mxu2 %vm141_vm3, %v1712_v51  ;;  %v585_v37 = vmul.f32 %v1405_v1, %v584_v28  ;;  %vm635_vm2 = vcmp.eq.f32.partialorder %v1744_v26, inf  ;;  %v638_v63 = vand.u32 2147483648, %v1744_v26 }
  0xde   :  { %v646_v31 = vmul.f32 %v645_v36, %v1738_v23  ;;  %816 = vmatpush.msra.mxu2 %v1800_v11  ;;  %v608_v50 = vsub.f32 1.5, %v607_v44  ;;  %v631_v52 = vmul.f32 0.5, %v630_v46  ;;  %vm637_vm4 = vcmp.eq.f32.partialorder %v1744_v26, 0.0 }
  0xdf   :  { %v624_v39 = vsel %vm623_vm10, %v1736_v22, %v622_v57  ;;  %v586_v40 = vmul.f32 %v585_v37, %v1719_v59  ;;  %vm1260_vm5 = vcmask 1042434   ;;  %vm1262_vm6 = vcmask 1043459  }
  0xe0   :  { %v627_v34 = vsel %vm625_vm11, %v626_v38, %v624_v39  ;;  %v648_v35 = vsel %vm647_vm12, %v1738_v23, %v646_v31  ;;  %817 = vmatpush.msra.mxu2 %v1712_v51  ;;  %v609_v15 = vmul.f32 %v1407_v33, %v608_v50  ;;  %v632_v58 = vsub.f32 1.5, %v631_v52 }
  0xe1   :  { %764 = vmatpush.msra.mxu0 %v627_v34  ;;  %v651_v22 = vsel %vm649_vm13, %v650_v5, %v648_v35  ;;  %v588_v48 = vsel %vm587_vm14, %v1719_v59, %v586_v40  ;;  %vm1264_vm7 = vcmask 1044484   ;;  %vm1266_vm8 = vcmask 1045509  }
  0xe2   :  { %932 = vmatpush.msrb.mxu2 %v1800_v11  ;;  %787 = vmatpush.msra.mxu1 %v651_v22  ;;  %v591_v23 = vsel %vm589_vm15, %v590_v43, %v588_v48  ;;  %v610_v59 = vmul.f32 %v609_v15, %v1742_v18  ;;  %v633_v16 = vmul.f32 %v1409_v42, %v632_v58 }
  0xe3   :  { %742 = vmatpush.msrb.mxu3 %v591_v23 }
  0xe4   :  { %933 = vmatpush.msrb.mxu2 %v1712_v51  ;;  %1359 = vmatmul.msk.f32.vlgmr.msrb.gmra.mxu3 %vm141_vm3, %v1712_v51  ;;  %v612_v60 = vsel %vm611_vm0, %v1742_v18, %v610_v59  ;;  %v634_v62 = vmul.f32 %v633_v16, %v1744_v26 }
  0xe5   :  { %1358 = vmatmul.msk.f32.gmra.mxu2 %vm141_vm3, %v1800_v11  ;;  %845 = vmatpush.msra.mxu3 %v1800_v11  ;;  %v615_v61 = vsel %vm613_vm1, %v614_v55, %v612_v60 }
  0xe6   :  { %765 = vmatpush.msra.mxu0 %v615_v61  ;;  %v636_v18 = vsel %vm635_vm2, %v1744_v26, %v634_v62 }
  0xe7   :  { %846 = vmatpush.msra.mxu3 %v1712_v51  ;;  %1361 = vmatmul.msk.f32.vlgmr.msra.gmra.mxu0 %vm141_vm3, %v1712_v51  ;;  %v639_v0 = vsel %vm637_vm4, %v638_v63, %v636_v18 }
  0xe8   :  { %874 = vmatpush.msrb.mxu0 %v1800_v11  ;;  %788 = vmatpush.msra.mxu1 %v639_v0 }
  0xe9   :  { %961 = vmatpush.msrb.mxu3 %v1800_v11  ;;  %1363 = vmatmul.msk.f32.vlgmr.msra.gmra.mxu1 %vm141_vm3, %v1712_v51 }
  0xea   :  { %875 = vmatpush.msrb.mxu0 %v1712_v51  ;;  %903 = vmatpush.msrb.mxu1 %v1800_v11 }
  0xeb   :  { %962 = vmatpush.msrb.mxu3 %v1712_v51 }
  0xec   :  { %1360 = vmatmul.msk.f32.gmra.mxu3 %vm141_vm3, %v1800_v11  ;;  %904 = vmatpush.msrb.mxu1 %v1712_v51 }
  0xef   :  { %1362 = vmatmul.msk.f32.gmra.mxu0 %vm141_vm3, %v1800_v11 }
  0xf1   :  { %1364 = vmatmul.msk.f32.gmra.mxu1 %vm141_vm3, %v1800_v11 }
 0x151   :  { %v675_v53 = vpop.f32.mrf.mxu0 }
 0x152   :  { %v698_v45 = vpop.f32.mrf.mxu1  ;;  %1365 = vmatmul.msk.f32.vlgmr.msra.gmra.mxu2 %vm141_vm3, %v675_v53 }
 0x153   :  { %1367 = vmatmul.msk.f32.vlgmr.msra.gmra.mxu3 %vm141_vm3, %v698_v45 }
 0x159   :  { %v678_v26 = vpop.f32.mrf.mxu0 }
 0x15a   :  { %v701_v1 = vpop.f32.mrf.mxu1  ;;  %1366 = vmatmul.msk.f32.gmra.mxu2 %vm141_vm3, %v678_v26 }
 0x15b   :  { %1368 = vmatmul.msk.f32.gmra.mxu3 %vm141_vm3, %v701_v1 }
 0x160   :  { %v721_v54 = vpop.f32.mrf.mxu2 }
 0x161   :  { %1369 = vmatmul.msk.f32.vlgmr.msrb.gmra.mxu0 %vm141_vm3, %v721_v54 }
 0x164   :  { %v767_v2 = vpop.f32.mrf.mxu0 }
 0x165   :  { %1373 = vmatmul.msk.f32.vlgmr.msrb.gmra.mxu2 %vm141_vm3, %v767_v2 }
 0x166   :  { %v790_v4 = vpop.f32.mrf.mxu1 }
 0x167   :  { %v744_v47 = vpop.f32.mrf.mxu3  ;;  %1375 = vmatmul.msk.f32.vlgmr.msrb.gmra.mxu3 %vm141_vm3, %v790_v4 }
 0x168   :  { %v724_v51 = vpop.f32.mrf.mxu2  ;;  %1371 = vmatmul.msk.f32.vlgmr.msrb.gmra.mxu1 %vm141_vm3, %v744_v47 }
 0x169   :  { %1370 = vmatmul.msk.f32.gmra.mxu0 %vm141_vm3, %v724_v51 }
 0x16c   :  { %v770_v7 = vpop.f32.mrf.mxu0 }
 0x16d   :  { %1374 = vmatmul.msk.f32.gmra.mxu2 %vm141_vm3, %v770_v7 }
 0x16e   :  { %v793_v8 = vpop.f32.mrf.mxu1 }
 0x16f   :  { %v747_v6 = vpop.f32.mrf.mxu3  ;;  %1376 = vmatmul.msk.f32.gmra.mxu3 %vm141_vm3, %v793_v8 }
 0x170   :  { %1372 = vmatmul.msk.f32.gmra.mxu1 %vm141_vm3, %v747_v6 }
 0x1d5   :  { %v1890_v10 = vpop.f32.mrf.mxu2 }
 0x1d6   :  { %v1892_v11 = vpop.f32.mrf.mxu3  ;;  %v1048_v13 = vsel %vm141_vm3, %v1890_v10, -inf  ;;  %v970_v12 = vsel %vm141_vm3, %v1890_v10, inf }
 0x1d7   :  { %v976_v14 = vsel %vm141_vm3, %v1892_v11, inf  ;;  %1049 = vmax.xlane.f32.xlu2 %v1048_v13  ;;  %971 = vmin.xlane.f32.xlu0 %v970_v12  ;;  %v1054_v20 = vsel %vm141_vm3, %v1892_v11, -inf }
 0x1d8   :  { %977 = vmin.xlane.f32.xlu1 %v976_v14 }
 0x1dd   :  { %v1900_v19 = vpop.f32.mrf.mxu2 }
 0x1de   :  { %v1902_v3 = vpop.f32.mrf.mxu3  ;;  %v1051_v21 = vsel %vm141_vm3, %v1900_v19, -inf  ;;  %v1910_v41 = vpop.f32.mrf.mxu0  ;;  %v973_v17 = vsel %vm141_vm3, %v1900_v19, inf }
 0x1df   :  { %v979_v24 = vsel %vm141_vm3, %v1902_v3, inf  ;;  %1055 = vmax.xlane.f32.xlu0 %v1054_v20  ;;  %1052 = vmax.xlane.f32.xlu2 %v1051_v21  ;;  %v982_v25 = vsel %vm141_vm3, %v1910_v41, inf  ;;  %v1057_v27 = vsel %vm141_vm3, %v1902_v3, -inf  ;;  %v1060_v33 = vsel %vm141_vm3, %v1910_v41, -inf }
 0x1e0   :  { %980 = vmin.xlane.f32.xlu1 %v979_v24 }
 0x1e5   :  { %v1918_v29 = vpop.f32.mrf.mxu1 }
 0x1e6   :  { %v1066_v56 = vsel %vm141_vm3, %v1918_v29, -inf  ;;  %v988_v30 = vsel %vm141_vm3, %v1918_v29, inf  ;;  %v1936_v38 = vpop.f32.mrf.mxu0 }
 0x1e7   :  { %983 = vmin.xlane.f32.xlu2 %v982_v25  ;;  %974 = vmin.xlane.f32.xlu0 %v973_v17  ;;  %v1063_v39 = vsel %vm141_vm3, %v1936_v38, -inf  ;;  %v985_v5 = vsel %vm141_vm3, %v1936_v38, inf }
 0x1e8   :  { %1058 = vmax.xlane.f32.xlu1 %v1057_v27  ;;  %v1926_v28 = vpop.f32.mrf.mxu2 }
 0x1e9   :  { %v1072_v32 = vsel %vm141_vm3, %v1926_v28, -inf  ;;  %v994_v37 = vsel %vm141_vm3, %v1926_v28, inf }
 0x1ea   :  { %v1928_v36 = vpop.f32.mrf.mxu3 }
 0x1eb   :  { %v1000_v57 = vsel %vm141_vm3, %v1928_v36, inf  ;;  %v1078_v48 = vsel %vm141_vm3, %v1928_v36, -inf }
 0x1ed   :  { %v1938_v31 = vpop.f32.mrf.mxu1 }
 0x1ee   :  { %v991_v9 = vsel %vm141_vm3, %v1938_v31, inf  ;;  %v1069_v42 = vsel %vm141_vm3, %v1938_v31, -inf }
 0x1ef   :  { %1067 = vmax.xlane.f32.xlu2 %v1066_v56  ;;  %989 = vmin.xlane.f32.xlu0 %v988_v30 }
 0x1f0   :  { %1061 = vmax.xlane.f32.xlu1 %v1060_v33  ;;  %v1946_v40 = vpop.f32.mrf.mxu2 }
 0x1f1   :  { %v997_v34 = vsel %vm141_vm3, %v1946_v40, inf  ;;  %v1075_v35 = vsel %vm141_vm3, %v1946_v40, -inf }
 0x1f2   :  { %v1954_v43 = vpop.f32.mrf.mxu3 }
 0x1f3   :  { %v1003_v22 = vsel %vm141_vm3, %v1954_v43, inf  ;;  %v1081_v44 = vsel %vm141_vm3, %v1954_v43, -inf }
 0x1f7   :  { %1001 = vmin.xlane.f32.xlu2 %v1000_v57  ;;  %1073 = vmax.xlane.f32.xlu0 %v1072_v32 }
 0x1f8   :  { %995 = vmin.xlane.f32.xlu1 %v994_v37 }
 0x1ff   :  { %1064 = vmax.xlane.f32.xlu2 %v1063_v39  ;;  %986 = vmin.xlane.f32.xlu0 %v985_v5 }
 0x200   :  { %992 = vmin.xlane.f32.xlu1 %v991_v9 }
 0x207   :  { %1070 = vmax.xlane.f32.xlu0 %v1069_v42  ;;  %998 = vmin.xlane.f32.xlu2 %v997_v34 }
 0x208   :  { %1076 = vmax.xlane.f32.xlu1 %v1075_v35 }
 0x20f   :  { %1004 = vmin.xlane.f32.xlu0 %v1003_v22  ;;  %1082 = vmax.xlane.f32.xlu2 %v1081_v44 }
 0x210   :  { %1079 = vmax.xlane.f32.xlu1 %v1078_v48 }
 0x24a   :  { %v1050_v49 = vpop.xlane.xlu2 %1049  ;;  %v972_v23 = vpop.xlane.xlu0 %971 }
 0x24b   :  { %v978_v50 = vpop.xlane.xlu1 %977 }
 0x252   :  { %v1056_v46 = vpop.xlane.xlu0 %1055  ;;  %v1053_v15 = vpop.xlane.xlu2 %1052 }
 0x253   :  { %v981_v52 = vpop.xlane.xlu1 %980  ;;  %v1084_v59 = vmax.f32 %v1050_v49, %v1053_v15 }
 0x254   :  { %v1013_v55 = vmin.f32 %v978_v50, %v981_v52 }
 0x255   :  { %v1085_v58 = vrot.slane %v1084_v59, 4 }
 0x256   :  { %v1014_v60 = vrot.slane %v1013_v55, 4 }
 0x257   :  { %v1086_v61 = vmax.f32 %v1084_v59, %v1085_v58 }
 0x258   :  { %v1015_v16 = vmin.f32 %v1013_v55, %v1014_v60 }
 0x259   :  { %v1087_v18 = vrot.slane %v1086_v61, 2 }
 0x25a   :  { %v984_v62 = vpop.xlane.xlu2 %983  ;;  %v975_v63 = vpop.xlane.xlu0 %974  ;;  %v1016_v45 = vrot.slane %v1015_v16, 2 }
 0x25b   :  { %v1059_v0 = vpop.xlane.xlu1 %1058  ;;  %v1006_v53 = vmin.f32 %v972_v23, %v975_v63  ;;  %v1088_v47 = vmax.f32 %v1086_v61, %v1087_v18 }
 0x25c   :  { %v1091_v26 = vmax.f32 %v1056_v46, %v1059_v0  ;;  %v1017_v2 = vmin.f32 %v1015_v16, %v1016_v45 }
 0x25d   :  { %v1007_v1 = vrot.slane %v1006_v53, 4  ;;  %v1089_v12 = vrot.slane %v1088_v47, 1 }
 0x25e   :  { %v1092_v54 = vrot.slane %v1091_v26, 4  ;;  %v1018_v21 = vrot.slane %v1017_v2, 1 }
 0x25f   :  { %v1008_v51 = vmin.f32 %v1006_v53, %v1007_v1  ;;  %v1090_v27 = vmax.f32 %v1088_v47, %v1089_v12 }
 0x260   :  { %v1093_v4 = vmax.f32 %v1091_v26, %v1092_v54  ;;  %v1019_v30 = vmin.f32 %v1017_v2, %v1018_v21 }
 0x261   :  { %v1009_v6 = vrot.slane %v1008_v51, 2 }
 0x262   :  { %v1094_v7 = vrot.slane %v1093_v4, 2  ;;  %v1068_v8 = vpop.xlane.xlu2 %1067  ;;  %v990_v13 = vpop.xlane.xlu0 %989  ;;  %v1128_v46 = vsub.f32 %v1892_v11, %v1019_v30  ;;  %v1129_v11 = vsub.f32 %v1902_v3, %v1019_v30 }
 0x263   :  { %v1010_v14 = vmin.f32 %v1008_v51, %v1009_v6  ;;  %v1062_v20 = vpop.xlane.xlu1 %1061 }
 0x264   :  { %v1095_v24 = vmax.f32 %v1093_v4, %v1094_v7 }
 0x265   :  { %v1011_v25 = vrot.slane %v1010_v14, 1 }
 0x266   :  { %v1096_v17 = vrot.slane %v1095_v24, 1 }
 0x267   :  { %v1012_v56 = vmin.f32 %v1010_v14, %v1011_v25 }
 0x268   :  { %v1097_v33 = vmax.f32 %v1095_v24, %v1096_v17 }
 0x269   :  { %v1138_v57 = vsub.f32 %v1090_v27, %v1012_v56  ;;  %v1126_v22 = vsub.f32 %v1890_v10, %v1012_v56  ;;  %v1127_v44 = vsub.f32 %v1900_v19, %v1012_v56 }
 0x26a   :  { %v1139_v32 = vsub.f32 %v1097_v33, %v1019_v30  ;;  %v1962_v37 = vpop.xlane.xlu2 %1001  ;;  %v1074_v39 = vpop.xlane.xlu0 %1073 }
 0x26b   :  { %v996_v5 = vpop.xlane.xlu1 %995  ;;  %v1144_v9 = vadd.f32 1e-12, %v1138_v57 }
 0x26c   :  { %v1145_v34 = vadd.f32 1e-12, %v1139_v32 }
 0x26d   :  { %1410 = vrcp.f32 %v1144_v9 }
 0x26e   :  { %1412 = vrcp.f32 %v1145_v34 }
 0x272   :  { %v1065_v35 = vpop.xlane.xlu2 %1064  ;;  %v987_v42 = vpop.xlane.xlu0 %986 }
 0x273   :  { %v1411_v48 = vpop.eup %1410  ;;  %v1098_v49 = vmax.f32 %v1062_v20, %v1065_v35  ;;  %v1020_v23 = vmin.f32 %v984_v62, %v987_v42  ;;  %v993_v50 = vpop.xlane.xlu1 %992 }
 0x274   :  { %v1413_v15 = vpop.eup %1412  ;;  %v1027_v52 = vmin.f32 %v990_v13, %v993_v50  ;;  %v1156_v59 = vmul.f32 %v1411_v48, %v1126_v22  ;;  %v1157_v55 = vmul.f32 %v1411_v48, %v1127_v44 }
 0x275   :  { %v1099_v58 = vrot.slane %v1098_v49, 4  ;;  %v1021_v60 = vrot.slane %v1020_v23, 4  ;;  %v1158_v61 = vmul.f32 %v1413_v15, %v1128_v46  ;;  %v1159_v47 = vmul.f32 %v1413_v15, %v1129_v11 }
 0x276   :  { %v1028_v16 = vrot.slane %v1027_v52, 4  ;;  %v1168_v63 = vsel %vm141_vm3, %v1156_v59, 0.0  ;;  %v1171_v10 = vsel %vm141_vm3, %v1157_v55, 0.0 }
 0x277   :  { %v1100_v18 = vmax.f32 %v1098_v49, %v1099_v58  ;;  %v1022_v19 = vmin.f32 %v1020_v23, %v1021_v60  ;;  %1169 = vadd.xlane.f32.xlu0 %v1168_v63  ;;  %1172 = vadd.xlane.f32.xlu1 %v1171_v10  ;;  %v1174_v62 = vsel %vm141_vm3, %v1158_v61, 0.0  ;;  %v1177_v3 = vsel %vm141_vm3, %v1159_v47, 0.0 }
 0x278   :  { %v1029_v0 = vmin.f32 %v1027_v52, %v1028_v16  ;;  %1175 = vadd.xlane.f32.xlu2 %v1174_v62 }
 0x279   :  { %v1101_v53 = vrot.slane %v1100_v18, 2  ;;  %v1023_v45 = vrot.slane %v1022_v19, 2 }
 0x27a   :  { %v1030_v26 = vrot.slane %v1029_v0, 2  ;;  %v1071_v1 = vpop.xlane.xlu0 %1070  ;;  %v999_v54 = vpop.xlane.xlu2 %998 }
 0x27b   :  { %v1102_v51 = vmax.f32 %v1100_v18, %v1101_v53  ;;  %v1024_v2 = vmin.f32 %v1022_v19, %v1023_v45  ;;  %v1105_v4 = vmax.f32 %v1068_v8, %v1071_v1  ;;  %v1077_v6 = vpop.xlane.xlu1 %1076  ;;  %v1034_v7 = vmin.f32 %v996_v5, %v999_v54 }
 0x27c   :  { %v1112_v13 = vmax.f32 %v1074_v39, %v1077_v6  ;;  %v1031_v24 = vmin.f32 %v1029_v0, %v1030_v26 }
 0x27d   :  { %v1103_v12 = vrot.slane %v1102_v51, 1  ;;  %v1025_v14 = vrot.slane %v1024_v2, 1  ;;  %v1106_v20 = vrot.slane %v1105_v4, 4  ;;  %v1035_v21 = vrot.slane %v1034_v7, 4 }
 0x27e   :  { %v1113_v25 = vrot.slane %v1112_v13, 4  ;;  %v1032_v9 = vrot.slane %v1031_v24, 1 }
 0x27f   :  { %v1104_v17 = vmax.f32 %v1102_v51, %v1103_v12  ;;  %v1026_v27 = vmin.f32 %v1024_v2, %v1025_v14  ;;  %v1107_v56 = vmax.f32 %v1105_v4, %v1106_v20  ;;  %v1036_v30 = vmin.f32 %v1034_v7, %v1035_v21  ;;  %1178 = vadd.xlane.f32.xlu0 %v1177_v3 }
 0x280   :  { %v1114_v33 = vmax.f32 %v1112_v13, %v1113_v25  ;;  %v1033_v55 = vmin.f32 %v1031_v24, %v1032_v9 }
 0x281   :  { %v1108_v57 = vrot.slane %v1107_v56, 2  ;;  %v1037_v32 = vrot.slane %v1036_v30, 2  ;;  %v1140_v8 = vsub.f32 %v1104_v17, %v1026_v27  ;;  %v1131_v62 = vsub.f32 %v1936_v38, %v1026_v27 }
 0x282   :  { %v1115_v5 = vrot.slane %v1114_v33, 2  ;;  %v1005_v39 = vpop.xlane.xlu0 %1004  ;;  %v1083_v34 = vpop.xlane.xlu2 %1082  ;;  %v1132_v13 = vsub.f32 %v1918_v29, %v1033_v55  ;;  %v1133_v12 = vsub.f32 %v1938_v31, %v1033_v55 }
 0x283   :  { %v1109_v35 = vmax.f32 %v1107_v56, %v1108_v57  ;;  %v1038_v42 = vmin.f32 %v1036_v30, %v1037_v32  ;;  %v1041_v22 = vmin.f32 %v1962_v37, %v1005_v39  ;;  %v1080_v44 = vpop.xlane.xlu1 %1079  ;;  %v1146_v48 = vadd.f32 1e-12, %v1140_v8 }
 0x284   :  { %v1116_v49 = vmax.f32 %v1114_v33, %v1115_v5  ;;  %v1119_v23 = vmax.f32 %v1080_v44, %v1083_v34  ;;  %v1130_v37 = vsub.f32 %v1910_v41, %v1026_v27 }
 0x285   :  { %v1110_v50 = vrot.slane %v1109_v35, 1  ;;  %v1039_v46 = vrot.slane %v1038_v42, 1  ;;  %v1042_v15 = vrot.slane %v1041_v22, 4  ;;  %1414 = vrcp.f32 %v1146_v48  ;;  %v66_v48 = vld [vmem:[#allocation7] sm:$0x3f] }
 0x286   :  { %v1117_v52 = vrot.slane %v1116_v49, 1  ;;  %v1120_v59 = vrot.slane %v1119_v23, 4  ;;  %68 = vst [vmem:[#allocation9] sm:$0x3f] %v66_v48 }
 0x287   :  { %v1111_v58 = vmax.f32 %v1109_v35, %v1110_v50  ;;  %v1040_v60 = vmin.f32 %v1038_v42, %v1039_v46  ;;  %v1043_v61 = vmin.f32 %v1041_v22, %v1042_v15  ;;  %v63_v46 = vld [vmem:[#allocation5 + $0x8] sm:$0x3f] }
 0x288   :  { %v1118_v16 = vmax.f32 %v1116_v49, %v1117_v52  ;;  %v1121_v63 = vmax.f32 %v1119_v23, %v1120_v59  ;;  %v67_v49 = vld [vmem:[#allocation7 + $0x8] sm:$0x3f]  ;;  %v62_v23 = vld [vmem:[#allocation5] sm:$0x3f]  ;;  %65 = vst [vmem:[#allocation8 + $0x8] sm:$0x3f] %v63_v46 }
 0x289   :  { %v1141_v10 = vsub.f32 %v1111_v58, %v1033_v55  ;;  %v1044_v18 = vrot.slane %v1043_v61, 2  ;;  %v1134_v20 = vsub.f32 %v1926_v28, %v1040_v60  ;;  %v1135_v29 = vsub.f32 %v1946_v40, %v1040_v60  ;;  %69 = vst [vmem:[#allocation9 + $0x8] sm:$0x3f] %v67_v49 }
 0x28a   :  { %v1122_v19 = vrot.slane %v1121_v63, 2  ;;  %v1142_v0 = vsub.f32 %v1118_v16, %v1040_v60  ;;  %1291 = dma.vmem_to_hbm [thread:$0]  %s1287_s2, 256, %s1289_s11, [#allocation10]   ;;  %64 = vst [vmem:[#allocation8] sm:$0x3f] %v62_v23 }
 0x28b   :  { %v1415_v11 = vpop.eup %1414  ;;  %v1147_v53 = vadd.f32 1e-12, %v1141_v10  ;;  %v1045_v45 = vmin.f32 %v1043_v61, %v1044_v18  ;;  %1280 = dma.vmem_to_hbm [thread:$0]  %s1276_s13, 256, %s1278_s16, [#allocation4]  }
 0x28c   :  { %v1123_v26 = vmax.f32 %v1121_v63, %v1122_v19  ;;  %v1160_v1 = vmul.f32 %v1415_v11, %v1130_v37  ;;  %v1161_v54 = vmul.f32 %v1415_v11, %v1131_v62  ;;  %v1148_v47 = vadd.f32 1e-12, %v1142_v0 }
 0x28d   :  { %v1046_v51 = vrot.slane %v1045_v45, 1  ;;  %1416 = vrcp.f32 %v1147_v53 }
 0x28e   :  { %v1124_v2 = vrot.slane %v1123_v26, 1  ;;  %v1180_v4 = vsel %vm141_vm3, %v1160_v1, 0.0  ;;  %v1183_v6 = vsel %vm141_vm3, %v1161_v54, 0.0  ;;  %1418 = vrcp.f32 %v1148_v47 }
 0x28f   :  { %v1047_v7 = vmin.f32 %v1045_v45, %v1046_v51  ;;  %1181 = vadd.xlane.f32.xlu1 %v1180_v4  ;;  %1184 = vadd.xlane.f32.xlu2 %v1183_v6 }
 0x290   :  { %v1125_v41 = vmax.f32 %v1123_v26, %v1124_v2 }
 0x291   :  { %v1137_v28 = vsub.f32 %v1954_v43, %v1047_v7  ;;  %v1136_v33 = vsub.f32 %v1928_v36, %v1047_v7 }
 0x292   :  { %v1143_v38 = vsub.f32 %v1125_v41, %v1047_v7 }
 0x293   :  { %v1417_v14 = vpop.eup %1416 }
 0x294   :  { %v1419_v21 = vpop.eup %1418  ;;  %v1149_v24 = vadd.f32 1e-12, %v1143_v38  ;;  %v1162_v25 = vmul.f32 %v1417_v14, %v1132_v13  ;;  %v1163_v3 = vmul.f32 %v1417_v14, %v1133_v12 }
 0x295   :  { %v1164_v17 = vmul.f32 %v1419_v21, %v1134_v20  ;;  %v1165_v31 = vmul.f32 %v1419_v21, %v1135_v29 }
 0x296   :  { %v1186_v27 = vsel %vm141_vm3, %v1162_v25, 0.0  ;;  %v1189_v56 = vsel %vm141_vm3, %v1163_v3, 0.0  ;;  %1420 = vrcp.f32 %v1149_v24 }
 0x297   :  { %1187 = vadd.xlane.f32.xlu0 %v1186_v27  ;;  %1190 = vadd.xlane.f32.xlu1 %v1189_v56  ;;  %v1192_v30 = vsel %vm141_vm3, %v1164_v17, 0.0  ;;  %v1195_v9 = vsel %vm141_vm3, %v1165_v31, 0.0 }
 0x298   :  { %1193 = vadd.xlane.f32.xlu2 %v1192_v30 }
 0x29c   :  { %v1421_v57 = vpop.eup %1420 }
 0x29d   :  { %v1167_v32 = vmul.f32 %v1421_v57, %v1137_v28  ;;  %v1166_v8 = vmul.f32 %v1421_v57, %v1136_v33 }
 0x29f   :  { %1196 = vadd.xlane.f32.xlu0 %v1195_v9  ;;  %v1201_v5 = vsel %vm141_vm3, %v1167_v32, 0.0  ;;  %v1198_v39 = vsel %vm141_vm3, %v1166_v8, 0.0  ;;  %vm1258_vm3 = vcmask 1041409  }
 0x2a0   :  { %1202 = vadd.xlane.f32.xlu2 %v1201_v5  ;;  %1199 = vadd.xlane.f32.xlu1 %v1198_v39 }
 0x2ea   :  { %v1170_v34 = vpop.xlane.xlu0 %1169  ;;  %v1173_v35 = vpop.xlane.xlu1 %1172 }
 0x2eb   :  { %v1176_v40 = vpop.xlane.xlu2 %1175  ;;  %v1204_v43 = vadd.f32 %v1173_v35, %v1170_v34 }
 0x2ed   :  { %v1205_v59 = vrot.slane %v1204_v43, 4 }
 0x2ef   :  { %v1206_v60 = vadd.f32 %v1205_v59, %v1204_v43 }
 0x2f1   :  { %v1207_v62 = vrot.slane %v1206_v60, 2 }
 0x2f2   :  { %v1179_v42 = vpop.xlane.xlu0 %1178 }
 0x2f3   :  { %v1211_v36 = vadd.f32 %v1179_v42, %v1176_v40  ;;  %v1208_v26 = vadd.f32 %v1207_v62, %v1206_v60 }
 0x2f5   :  { %v1212_v15 = vrot.slane %v1211_v36, 4  ;;  %v1209_v38 = vrot.slane %v1208_v26, 1 }
 0x2f7   :  { %v1213_v55 = vadd.f32 %v1212_v15, %v1211_v36  ;;  %v1210_v3 = vadd.f32 %v1209_v38, %v1208_v26 }
 0x2f9   :  { %v1214_v18 = vrot.slane %v1213_v55, 2  ;;  %v1246_v33 = vmul.f32 0.00390625, %v1210_v3 }
 0x2fb   :  { %v1215_v11 = vadd.f32 %v1214_v18, %v1213_v55 }
 0x2fd   :  { %v1216_v4 = vrot.slane %v1215_v11, 1 }
 0x2ff   :  { %v1217_v20 = vadd.f32 %v1216_v4, %v1215_v11 }
 0x301   :  { %v1247_v30 = vmul.f32 0.00390625, %v1217_v20 }
 0x302   :  { %v1182_v22 = vpop.xlane.xlu1 %1181  ;;  %v1185_v44 = vpop.xlane.xlu2 %1184 }
 0x303   :  { %v1218_v50 = vadd.f32 %v1185_v44, %v1182_v22  ;;  %v1259_v9 = vsel %vm1258_vm3, %v1247_v30, %v1246_v33 }
 0x305   :  { %v1219_v52 = vrot.slane %v1218_v50, 4 }
 0x307   :  { %v1220_v58 = vadd.f32 %v1219_v52, %v1218_v50 }
 0x309   :  { %v1221_v19 = vrot.slane %v1220_v58, 2 }
 0x30a   :  { %v1188_v61 = vpop.xlane.xlu0 %1187  ;;  %v1191_v16 = vpop.xlane.xlu1 %1190 }
 0x30b   :  { %v1225_v63 = vadd.f32 %v1191_v16, %v1188_v61  ;;  %v1194_v10 = vpop.xlane.xlu2 %1193  ;;  %v1222_v53 = vadd.f32 %v1221_v19, %v1220_v58 }
 0x30d   :  { %v1226_v37 = vrot.slane %v1225_v63, 4  ;;  %v1223_v7 = vrot.slane %v1222_v53, 1 }
 0x30f   :  { %v1227_v0 = vadd.f32 %v1226_v37, %v1225_v63  ;;  %v1224_v24 = vadd.f32 %v1223_v7, %v1222_v53 }
 0x311   :  { %v1228_v45 = vrot.slane %v1227_v0, 2  ;;  %v1248_v31 = vmul.f32 0.00390625, %v1224_v24 }
 0x312   :  { %v1197_v1 = vpop.xlane.xlu0 %1196 }
 0x313   :  { %v1229_v54 = vadd.f32 %v1228_v45, %v1227_v0  ;;  %v1232_v47 = vadd.f32 %v1197_v1, %v1194_v10  ;;  %v1200_v51 = vpop.xlane.xlu1 %1199  ;;  %v1203_v2 = vpop.xlane.xlu2 %1202  ;;  %v1261_v39 = vsel %vm1260_vm5, %v1248_v31, %v1259_v9 }
 0x314   :  { %v1239_v6 = vadd.f32 %v1203_v2, %v1200_v51 }
 0x315   :  { %v1233_v41 = vrot.slane %v1232_v47, 4  ;;  %v1230_v13 = vrot.slane %v1229_v54, 1 }
 0x316   :  { %v1240_v12 = vrot.slane %v1239_v6, 4 }
 0x317   :  { %v1234_v14 = vadd.f32 %v1233_v41, %v1232_v47  ;;  %v1231_v17 = vadd.f32 %v1230_v13, %v1229_v54 }
 0x318   :  { %v1241_v21 = vadd.f32 %v1240_v12, %v1239_v6 }
 0x319   :  { %v1235_v25 = vrot.slane %v1234_v14, 2  ;;  %v1249_v57 = vmul.f32 0.00390625, %v1231_v17 }
 0x31a   :  { %v1242_v27 = vrot.slane %v1241_v21, 2 }
 0x31b   :  { %v1236_v56 = vadd.f32 %v1235_v25, %v1234_v14  ;;  %v1263_v40 = vsel %vm1262_vm6, %v1249_v57, %v1261_v39 }
 0x31c   :  { %v1243_v29 = vadd.f32 %v1242_v27, %v1241_v21 }
 0x31d   :  { %v1237_v28 = vrot.slane %v1236_v56, 1 }
 0x31e   :  { %v1244_v32 = vrot.slane %v1243_v29, 1 }
 0x31f   :  { %v1238_v8 = vadd.f32 %v1237_v28, %v1236_v56 }
 0x320   :  { %v1245_v5 = vadd.f32 %v1244_v32, %v1243_v29 }
 0x321   :  { %v1250_v34 = vmul.f32 0.00390625, %v1238_v8 }
 0x322   :  { %v1251_v35 = vmul.f32 0.00390625, %v1245_v5 }
 0x323   :  { %v1265_v42 = vsel %vm1264_vm7, %v1250_v34, %v1263_v40 }
 0x324   :  { %v1267_v36 = vsel %vm1266_vm8, %v1251_v35, %v1265_v42 }
 0x325   :  { %1269 = vst [vmem:[#allocation11] sm:$0x3f] %v1267_v36 }
 0x326   :  { %1302 = dma.vmem_to_hbm [thread:$0]  %s1298_s4, 128, %s1300_s19, [#allocation10]  }
 0x327   :  { %1570 = dma.done.wait [#allocation4], 256  }
 0x328   :  { %1571 = vsyncadd [#allocation4], 4294967040 }
 0x329   :  { %1572 = dma.done.wait [#allocation10], 384  }
 0x32a   :  { %1573 = vsyncadd [#allocation10], 4294966912 }
 0x32b   :  { %1315 = vsyncpa [#allocation3], 1 }
 0x32c   :  { %1316 = vsyncpa [#allocation6], 1 }
 0x32d   :  { %1317 = vsyncpa [#allocation4], 1 }
 0x32e   :  { %1318 = vsyncpa [#allocation10], 1 }

</bundles_post_ra>
